<compile_context>
chip_gen: v7x
topology: tpu7x:2x2x1
jax: 0.10.0
libtpu: 0.0.40
codegen_flags: <defaults>
</compile_context>

<pallas_src>
import functools

import jax
import jax.numpy as jnp
from jax import lax
from jax.experimental import pallas as pl
from jax.experimental.pallas import tpu as pltpu


def _round_up(x: int, m: int) -> int:
    return ((x + m - 1) // m) * m


def _vmem_capacity_bytes() -> int:
    """Physical VMEM per TensorCore; conservative fallback if query fails."""
    try:
        info = pltpu.get_tpu_info()
        cap = int(getattr(info, "vmem_capacity_bytes", 0))
        if cap > 0:
            return cap
    except Exception:
        pass
    return 128 * 2 ** 20  # v5e/v6e physical; v7x reports 64 MiB via the query


def _self_output_kernel(x_ref, res_ref, w_ref, b_ref, g_ref, beta_ref, o_ref,
                        *, eps: float):
    # x_ref:    (tm, H)  hidden_states tile (compute dtype, e.g. bf16)
    # res_ref:  (tm, H)  residual (input_tensor) tile (compute dtype)
    # w_ref:    (H, H)   dense weight, pre-transposed to (in, out)
    # b_ref:    (1, H)   dense bias (f32)
    # g_ref:    (1, H)   LayerNorm gamma (f32)
    # beta_ref: (1, H)   LayerNorm beta (f32)

    # Matmul in the operands' native dtype (bf16 x bf16 drives the MXU at full
    # rate); accumulate in f32 via preferred_element_type.
    y = jnp.dot(x_ref[...], w_ref[...], preferred_element_type=jnp.float32)

    b = b_ref[...].astype(jnp.float32)
    g = g_ref[...].astype(jnp.float32)
    beta = beta_ref[...].astype(jnp.float32)

    # Dropout: identity at inference time.
    # TODO(synk): training-mode dropout (pltpu.prng_random_bits mask) not implemented.

    # Bias + residual add in f32.
    h = y + b + res_ref[...].astype(jnp.float32)

    # LayerNorm over the last dim — two-pass statistics (mean, then variance of
    # the centered tensor). No cancellation risk; the extra pass is hidden
    # filler work on the VALU while the MXU/DMA dominate.
    inv_h = jnp.float32(1.0 / h.shape[-1])
    mean = jnp.sum(h, axis=-1, keepdims=True) * inv_h
    centered = h - mean
    var = jnp.sum(centered * centered, axis=-1, keepdims=True) * inv_h
    out = centered * lax.rsqrt(var + eps) * g + beta

    o_ref[...] = out.astype(o_ref.dtype)


def prepare_params(dense_w, dense_b, ln_w, ln_b, *, compute_dtype=jnp.bfloat16):
    """One-time parameter preparation.

    Transposes the PyTorch-layout [out, in] weight to [in, out] so the kernel
    does a plain x @ W, casts it to `compute_dtype` (bf16 by default so the MXU
    runs at full rate), and reshapes the 1-D vectors to (1, H) in f32.
    """
    H = dense_w.shape[0]
    w_t = dense_w.T
    if compute_dtype is not None:
        w_t = w_t.astype(compute_dtype)
    return (w_t,
            dense_b.reshape(1, H).astype(jnp.float32),
            ln_w.reshape(1, H).astype(jnp.float32),
            ln_b.reshape(1, H).astype(jnp.float32))


def roberta_self_output(hidden_states, input_tensor, w_t, dense_b2, ln_w2, ln_b2,
                        *, eps: float, block_rows: int = 1024):
    """hidden_states, input_tensor: [B, S, H].  w_t: [H_in, H_out] (pre-transposed)."""
    B, S, H = hidden_states.shape
    rows = B * S
    out_dtype = hidden_states.dtype
    compute_dtype = w_t.dtype

    x2 = hidden_states.reshape(rows, H)
    r2 = input_tensor.reshape(rows, H)
    # Stream activations in the weight's compute dtype (bf16 halves the HBM
    # traffic of this memory-bound op; upstream layers normally already emit
    # bf16 so this cast is a no-op in a real model).
    if x2.dtype != compute_dtype:
        x2 = x2.astype(compute_dtype)
    if r2.dtype != compute_dtype:
        r2 = r2.astype(compute_dtype)

    act_bytes = jnp.dtype(compute_dtype).itemsize
    w_bytes = jnp.dtype(w_t.dtype).itemsize
    out_bytes = jnp.dtype(out_dtype).itemsize

    vmem_cap = _vmem_capacity_bytes()
    if H * H * w_bytes > vmem_cap // 2:
        # TODO(synk): K-axis grid + f32 VMEM accumulator for very large hidden
        # sizes; RoBERTa-base/large (768/1024) fit comfortably resident.
        raise ValueError(
            "hidden_size too large for a fully resident weight in VMEM; "
            "use a bf16 weight or add K-blocking")

    # ---- Row tile: as large as the VMEM budget allows, >= 2 grid steps when
    # there is enough work (keeps both v7x TensorCores busy), multiple of 256.
    budget = int(vmem_cap * 0.70)
    # per-row cost: x/res double-buffered + out double-buffered + ~3 f32
    # epilogue temporaries (y / h / centered).
    per_row = 2 * 2 * H * act_bytes + 2 * H * out_bytes + 3 * H * 4
    fixed = H * H * w_bytes + 8 * H * 4 + (2 << 20)   # weight + vectors + slack
    tm_budget = max(8, (budget - fixed) // per_row)

    target = max(256, (min(block_rows, tm_budget) // 256) * 256)
    if rows <= 256:
        tm = max(8, _round_up(rows, 8))
    elif rows <= 2 * target:
        tm = max(256, _round_up(pl.cdiv(rows, 2), 256))   # >= 2 grid steps
    else:
        tm = target
    tm = min(tm, max(8, _round_up(rows, 8)))               # never bigger than the work

    grid = (pl.cdiv(rows, tm),)   # ragged last block handled by Pallas masking

    vmem_need = H * H * w_bytes + 8 * H * 4 + tm * per_row
    vmem_limit = int(min(int(vmem_cap * 0.75),
                         max(vmem_need + (4 << 20), 32 << 20)))

    cost = pl.CostEstimate(
        flops=2 * rows * H * H,
        transcendentals=rows,                              # one rsqrt per row
        bytes_accessed=rows * H * (2 * act_bytes + out_bytes)
        + H * H * w_bytes + 3 * H * 4)

    # Constant operands: constant index_map, single-buffered to free VMEM for
    # bigger row tiles.
    const_map = lambda i: (0, 0)
    w_spec = pl.BlockSpec((H, H), const_map, pipeline_mode=pl.Buffered(1))
    vec_spec = pl.BlockSpec((1, H), const_map, pipeline_mode=pl.Buffered(1))

    out = pl.pallas_call(
        functools.partial(_self_output_kernel, eps=eps),
        out_shape=jax.ShapeDtypeStruct((rows, H), out_dtype),
        grid_spec=pltpu.PrefetchScalarGridSpec(
            num_scalar_prefetch=0,
            grid=grid,
            in_specs=[
                pl.BlockSpec((tm, H), lambda i: (i, 0)),   # hidden_states tile
                pl.BlockSpec((tm, H), lambda i: (i, 0)),   # residual tile
                w_spec,                                    # dense weight (transposed)
                vec_spec,                                  # dense bias
                vec_spec,                                  # LN gamma
                vec_spec,                                  # LN beta
            ],
            out_specs=pl.BlockSpec((tm, H), lambda i: (i, 0)),
        ),
        compiler_params=pltpu.CompilerParams(
            dimension_semantics=("parallel",),
            vmem_limit_bytes=vmem_limit),
        cost_estimate=cost,
    )(x2, r2, w_t, dense_b2, ln_w2, ln_b2)

    return out.reshape(B, S, H)


def _reference(hidden_states, input_tensor, dense_w, dense_b, ln_w, ln_b, eps):
    y = jnp.einsum("bsh,oh->bso", hidden_states, dense_w) + dense_b
    h = y + input_tensor
    mean = jnp.mean(h, axis=-1, keepdims=True)
    var = jnp.mean(jnp.square(h - mean), axis=-1, keepdims=True)
    return (h - mean) / jnp.sqrt(var + eps) * ln_w + ln_b


if __name__ == "__main__":
    # Small shapes consistent with the module: batch=2, seq=8, hidden=32
    B, S, H = 2, 8, 32
    eps = 1e-5

    key = jax.random.PRNGKey(0)
    k1, k2, k3, k4 = jax.random.split(key, 4)

    hidden_states = jax.random.normal(k1, (B, S, H), dtype=jnp.float32)
    input_tensor = jax.random.normal(k2, (B, S, H), dtype=jnp.float32)

    # Deterministic parameter init (nn.Linear-like scale; LayerNorm gamma=1, beta=0)
    dense_w = jax.random.uniform(k3, (H, H), minval=-1.0, maxval=1.0,
                                 dtype=jnp.float32) / jnp.sqrt(jnp.float32(H))
    dense_b = jax.random.uniform(k4, (H,), minval=-1.0, maxval=1.0,
                                 dtype=jnp.float32) / jnp.sqrt(jnp.float32(H))
    ln_w = jnp.ones((H,), dtype=jnp.float32)
    ln_b = jnp.zeros((H,), dtype=jnp.float32)

    ref = _reference(hidden_states, input_tensor, dense_w, dense_b, ln_w, ln_b, eps)

    # f32 compute path: tight numerical check.
    w32, b2, g2, beta2 = prepare_params(dense_w, dense_b, ln_w, ln_b,
                                        compute_dtype=None)
    out32 = jax.block_until_ready(
        roberta_self_output(hidden_states, input_tensor, w32, b2, g2, beta2, eps=eps))
    assert out32.shape == (B, S, H)
    assert jnp.allclose(out32, ref, atol=1e-4, rtol=1e-4), "f32 mismatch vs reference"

    # bf16 streaming path (default / recommended for production): both matmul
    # operands in bf16, f32 epilogue — looser tolerance.
    wbf, b2b, g2b, beta2b = prepare_params(dense_w, dense_b, ln_w, ln_b)
    outbf = jax.block_until_ready(
        roberta_self_output(hidden_states, input_tensor, wbf, b2b, g2b, beta2b, eps=eps))
    assert outbf.shape == (B, S, H)
    assert jnp.allclose(outbf, ref, atol=5e-2, rtol=5e-2), "bf16 mismatch vs reference"

    # Ragged-row check (rows not a multiple of the tile): exercises the
    # partial-block masking path — no host-side padding copies anymore.
    S2 = 7
    hs2 = jax.random.normal(k1, (B, S2, H), dtype=jnp.float32)
    it2 = jax.random.normal(k2, (B, S2, H), dtype=jnp.float32)
    out2 = jax.block_until_ready(
        roberta_self_output(hs2, it2, w32, b2, g2, beta2, eps=eps))
    ref2 = _reference(hs2, it2, dense_w, dense_b, ln_w, ln_b, eps)
    assert out2.shape == (B, S2, H)
    assert jnp.allclose(out2, ref2, atol=1e-4, rtol=1e-4), "ragged mismatch vs reference"

    print("KERNEL_OK")
</pallas_src>

<mosaic_0001>
module attributes {stable_mosaic.version = 11 : i64} {
  func.func @_self_output_kernel(%arg0: i32, %arg1: memref<16x32xf32, #tpu.memory_space<vmem>>, %arg2: memref<16x32xf32, #tpu.memory_space<vmem>>, %arg3: memref<32x32xf32, #tpu.memory_space<vmem>>, %arg4: memref<1x32xf32, #tpu.memory_space<vmem>>, %arg5: memref<1x32xf32, #tpu.memory_space<vmem>>, %arg6: memref<1x32xf32, #tpu.memory_space<vmem>>, %arg7: memref<16x32xf32, #tpu.memory_space<vmem>>) attributes {dimension_semantics = [#tpu.dimension_semantics<parallel>], iteration_bounds = array<i64: 1>, scalar_prefetch = 0 : i64, scratch_operands = 0 : i64, tpu.core_type = #tpu.core_type<tc>, window_params = [{transform_indices = @transform_0, window_bounds = array<i64: 16, 32>}, {transform_indices = @transform_1, window_bounds = array<i64: 16, 32>}, {pipeline_mode = #tpu.pipeline_mode<synchronous>, transform_indices = @transform_2, window_bounds = array<i64: 32, 32>}, {pipeline_mode = #tpu.pipeline_mode<synchronous>, transform_indices = @transform_3, window_bounds = array<i64: 1, 32>}, {pipeline_mode = #tpu.pipeline_mode<synchronous>, transform_indices = @transform_4, window_bounds = array<i64: 1, 32>}, {pipeline_mode = #tpu.pipeline_mode<synchronous>, transform_indices = @transform_5, window_bounds = array<i64: 1, 32>}, {transform_indices = @transform_6, window_bounds = array<i64: 16, 32>}]} {
    %c0 = arith.constant 0 : index
    %c0_0 = arith.constant 0 : index
    %0 = vector.load %arg1[%c0, %c0_0] : memref<16x32xf32, #tpu.memory_space<vmem>>, vector<16x32xf32>
    %c0_1 = arith.constant 0 : index
    %c0_2 = arith.constant 0 : index
    %1 = vector.load %arg3[%c0_1, %c0_2] : memref<32x32xf32, #tpu.memory_space<vmem>>, vector<32x32xf32>
    %cst = arith.constant dense<0.000000e+00> : vector<16x32xf32>
    %2 = tpu.matmul %0, %1, %cst {dimension_numbers = #tpu.dot_dimension_numbers<[1], [0], [0], [1], [0, 0, 1, 1], [], []>} : vector<16x32xf32>, vector<32x32xf32>, vector<16x32xf32> -> vector<16x32xf32>
    %c0_3 = arith.constant 0 : index
    %c0_4 = arith.constant 0 : index
    %3 = vector.load %arg4[%c0_3, %c0_4] : memref<1x32xf32, #tpu.memory_space<vmem>>, vector<1x32xf32>
    %c0_5 = arith.constant 0 : index
    %c0_6 = arith.constant 0 : index
    %4 = vector.load %arg5[%c0_5, %c0_6] : memref<1x32xf32, #tpu.memory_space<vmem>>, vector<1x32xf32>
    %c0_7 = arith.constant 0 : index
    %c0_8 = arith.constant 0 : index
    %5 = vector.load %arg6[%c0_7, %c0_8] : memref<1x32xf32, #tpu.memory_space<vmem>>, vector<1x32xf32>
    %6 = vector.broadcast %3 : vector<1x32xf32> to vector<16x32xf32>
    %7 = arith.addf %2, %6 : vector<16x32xf32>
    %c0_9 = arith.constant 0 : index
    %c0_10 = arith.constant 0 : index
    %8 = vector.load %arg2[%c0_9, %c0_10] : memref<16x32xf32, #tpu.memory_space<vmem>>, vector<16x32xf32>
    %9 = arith.addf %7, %8 : vector<16x32xf32>
    %cst_11 = arith.constant dense<0.000000e+00> : vector<16xf32>
    %10 = vector.multi_reduction <add>, %9, %cst_11 [1] : vector<16x32xf32> to vector<16xf32>
    %11 = vector.shape_cast %10 : vector<16xf32> to vector<16x1xf32>
    %cst_12 = arith.constant 3.125000e-02 : f32
    %12 = vector.broadcast %cst_12 : f32 to vector<16x1xf32>
    %13 = arith.mulf %11, %12 : vector<16x1xf32>
    %14 = vector.broadcast %13 : vector<16x1xf32> to vector<16x32xf32>
    %15 = arith.subf %9, %14 : vector<16x32xf32>
    %16 = arith.mulf %15, %15 : vector<16x32xf32>
    %cst_13 = arith.constant dense<0.000000e+00> : vector<16xf32>
    %17 = vector.multi_reduction <add>, %16, %cst_13 [1] : vector<16x32xf32> to vector<16xf32>
    %18 = vector.shape_cast %17 : vector<16xf32> to vector<16x1xf32>
    %cst_14 = arith.constant 3.125000e-02 : f32
    %19 = vector.broadcast %cst_14 : f32 to vector<16x1xf32>
    %20 = arith.mulf %18, %19 : vector<16x1xf32>
    %cst_15 = arith.constant 9.99999974E-6 : f32
    %21 = vector.broadcast %cst_15 : f32 to vector<16x1xf32>
    %22 = arith.addf %20, %21 : vector<16x1xf32>
    %23 = math.rsqrt %22 : vector<16x1xf32>
    %24 = vector.broadcast %23 : vector<16x1xf32> to vector<16x32xf32>
    %25 = arith.mulf %15, %24 : vector<16x32xf32>
    %26 = vector.broadcast %4 : vector<1x32xf32> to vector<16x32xf32>
    %27 = arith.mulf %25, %26 : vector<16x32xf32>
    %28 = vector.broadcast %5 : vector<1x32xf32> to vector<16x32xf32>
    %29 = arith.addf %27, %28 : vector<16x32xf32>
    %c0_16 = arith.constant 0 : index
    %c0_17 = arith.constant 0 : index
    %30 = vector.load %arg7[%c0_16, %c0_17] : memref<16x32xf32, #tpu.memory_space<vmem>>, vector<16x32xf32>
    tpu.vector_store %arg7[%c0_16, %c0_17], %29 {strides = array<i32>} : memref<16x32xf32, #tpu.memory_space<vmem>>, vector<16x32xf32>,
    return
  }
  func.func @transform_0(%arg0: i32) -> (i32, i32) {
    %c0_i32 = arith.constant 0 : i32
    %c0_i32_0 = arith.constant 0 : i32
    return %arg0, %c0_i32 : i32, i32
  }
  func.func @transform_1(%arg0: i32) -> (i32, i32) {
    %c0_i32 = arith.constant 0 : i32
    %c0_i32_0 = arith.constant 0 : i32
    return %arg0, %c0_i32 : i32, i32
  }
  func.func @transform_2(%arg0: i32) -> (i32, i32) {
    %c0_i32 = arith.constant 0 : i32
    %c0_i32_0 = arith.constant 0 : i32
    %c0_i32_1 = arith.constant 0 : i32
    return %c0_i32, %c0_i32_0 : i32, i32
  }
  func.func @transform_3(%arg0: i32) -> (i32, i32) {
    %c0_i32 = arith.constant 0 : i32
    %c0_i32_0 = arith.constant 0 : i32
    %c0_i32_1 = arith.constant 0 : i32
    return %c0_i32, %c0_i32_0 : i32, i32
  }
  func.func @transform_4(%arg0: i32) -> (i32, i32) {
    %c0_i32 = arith.constant 0 : i32
    %c0_i32_0 = arith.constant 0 : i32
    %c0_i32_1 = arith.constant 0 : i32
    return %c0_i32, %c0_i32_0 : i32, i32
  }
  func.func @transform_5(%arg0: i32) -> (i32, i32) {
    %c0_i32 = arith.constant 0 : i32
    %c0_i32_0 = arith.constant 0 : i32
    %c0_i32_1 = arith.constant 0 : i32
    return %c0_i32, %c0_i32_0 : i32, i32
  }
  func.func @transform_6(%arg0: i32) -> (i32, i32) {
    %c0_i32 = arith.constant 0 : i32
    %c0_i32_0 = arith.constant 0 : i32
    return %arg0, %c0_i32 : i32, i32
  }
}

</mosaic_0001>

<bundles_post_ra>
// kernel: tpu_custom_call.1
= control target key start
LH: loop header
LB: loop body
LE: loop exit
PB: predicated region body
PF: predicated region fallthrough
CT: control target
= control target key end

     0   :  { %11 = vsyncpa [#allocation3], 0  ;;  %s487_s0 = inlined_call_operand.hbm [shape: f32[16,32], index: 0, kind: input, shape index: {}]   ;;  %s488_s1 = inlined_call_operand.hbm [shape: f32[16,32], index: 1, kind: input, shape index: {}]   ;;  %s489_s2 = inlined_call_operand.hbm [shape: f32[32,32], index: 2, kind: input, shape index: {}]   ;;  %s490_s3 = inlined_call_operand.vmem [shape: f32[1,32], index: 3, kind: input, shape index: {}]   ;;  %s491_s4 = inlined_call_operand.vmem [shape: f32[1,32], index: 4, kind: input, shape index: {}]   ;;  %s492_s5 = inlined_call_operand.vmem [shape: f32[1,32], index: 5, kind: input, shape index: {}]   ;;  %s493_s6 = inlined_call_operand.hbm [shape: f32[16,32], index: 6, kind: output, shape index: {}]  }
   0x1   :  { %12 = vsyncpa [#allocation6], 0 }
   0x2   :  { %13 = vsyncpa [#allocation4], 0  ;;  %s362_s21 = smov [#allocation5]   ;;  %s363_s23 = smov [#allocation2]  }
   0x3   :  { %s31_s22 = sshll.u32 %s362_s21, 4  ;;  %s19_s24 = sshll.u32 %s363_s23, 4  ;;  %s32_s22 = int_to_ptr.vmem [resolvable:$true] %s31_s22  ;;  %s403_s24 = int_to_ptr.vmem [resolvable:$true] %s19_s24 }
   0x4   :  { %s268_s27 = scalar_lea.hbm %s488_s1, 256 }
   0x5   :  { %p269_p0 = scmp.ne.s32.totalorder %s488_s1, %s268_s27  ;;  %p272_p1 = scmp.lt.u32.totalorder %s268_s27, %s488_s1 }
   0x7   :  { %p274_p2 = pnand %p272_p1, %p269_p0 }
   0x9   :  { %277 = shalt.err (!%p274_p2)
}
   0xa   :  { %s278_s8 = scalar_lea.vmem %s32_s22, 256  ;;  %p283_p4 = scmp.lt.s32.totalorder %s32_s22, %s32_s22 }
   0xb   :  { %p279_p3 = scmp.ne.s32.totalorder %s32_s22, %s278_s8  ;;  %p284_p5 = scmp.lt.s32.totalorder %s278_s8, %s278_s8 }
   0xd   :  { %p285_p6 = por %p284_p5, %p283_p4 }
   0xf   :  { %p286_p7 = pnand %p285_p6, %p279_p3 }
  0x11   :  { %289 = shalt.err (!%p286_p7)
}
  0x12   :  { %s364_s9 = smov 128   ;;  %s365_s10 = smov 8  }
  0x13   :  { %37 = dma.hbm_to_vmem [thread:$0]  %s488_s1, 256, %s32_s22, [#allocation6], %s364_s9, %s364_s9, %s365_s10  }
  0x14   :  { %s290_s15 = scalar_lea.hbm %s487_s0, 256 }
  0x15   :  { %p291_p8 = scmp.ne.s32.totalorder %s487_s0, %s290_s15  ;;  %p294_p9 = scmp.lt.u32.totalorder %s290_s15, %s487_s0 }
  0x17   :  { %p296_p10 = pnand %p294_p9, %p291_p8 }
  0x19   :  { %299 = shalt.err (!%p296_p10)
}
  0x1a   :  { %s300_s20 = scalar_lea.vmem %s403_s24, 256  ;;  %p305_p12 = scmp.lt.s32.totalorder %s403_s24, %s403_s24 }
  0x1b   :  { %p301_p11 = scmp.ne.s32.totalorder %s403_s24, %s300_s20  ;;  %p306_p13 = scmp.lt.s32.totalorder %s300_s20, %s300_s20 }
  0x1d   :  { %p307_p0 = por %p306_p13, %p305_p12 }
  0x1f   :  { %p308_p1 = pnand %p307_p0, %p301_p11 }
  0x21   :  { %311 = shalt.err (!%p308_p1)
}
  0x22   :  { %25 = dma.hbm_to_vmem [thread:$0]  %s487_s0, 256, %s403_s24, [#allocation3], %s364_s9, %s364_s9, %s365_s10  }
  0x23   :  { %s366_s22 = smov [#allocation7]   ;;  %s312_s27 = scalar_lea.hbm %s489_s2, 512 }
  0x24   :  { %s43_s23 = sshll.u32 %s366_s22, 4  ;;  %p313_p2 = scmp.ne.s32.totalorder %s489_s2, %s312_s27  ;;  %s44_s23 = int_to_ptr.vmem [resolvable:$true] %s43_s23 }
  0x25   :  { %p316_p3 = scmp.lt.u32.totalorder %s312_s27, %s489_s2 }
  0x27   :  { %p318_p4 = pnand %p316_p3, %p313_p2 }
  0x29   :  { %321 = shalt.err (!%p318_p4)
}
  0x2a   :  { %s322_s8 = scalar_lea.vmem %s44_s23, 512  ;;  %p327_p6 = scmp.lt.s32.totalorder %s44_s23, %s44_s23 }
  0x2b   :  { %p323_p5 = scmp.ne.s32.totalorder %s44_s23, %s322_s8  ;;  %p328_p7 = scmp.lt.s32.totalorder %s322_s8, %s322_s8 }
  0x2d   :  { %p329_p8 = por %p328_p7, %p327_p6 }
  0x2f   :  { %p330_p9 = pnand %p329_p8, %p323_p5 }
  0x31   :  { %333 = shalt.err (!%p330_p9)
}
  0x32   :  { %49 = dma.hbm_to_vmem [thread:$0]  %s489_s2, 512, %s44_s23, [#allocation6], %s364_s9, %s364_s9, %s365_s10  }
  0x33   :  { %356 = dma.done.wait [#allocation3], 256  }
  0x34   :  { %357 = vsyncadd [#allocation3], 4294967040 }
  0x35   :  { %358 = dma.done.wait [#allocation6], 768  }
  0x36   :  { %359 = vsyncadd [#allocation6], 4294966528  ;;  %vm80_vm0 = vcmask 261120   ;;  %v67_v0 = vld [vmem:[#allocation7] sm:$0xff]  ;;  %v68_v1 = vld [vmem:[#allocation7 + $0x8] sm:$0xff]  ;;  %s367_s15 = smov [#allocation8]  }
  0x37   :  { %v69_v2 = vld [vmem:[#allocation7 + $0x10] sm:$0xff]  ;;  %v250_v3 = vpack.c.bf16 %v68_v1, %v67_v0  ;;  %v70_v4 = vld [vmem:[#allocation7 + $0x18] sm:$0xff]  ;;  %v65_v5 = vld [vmem:[#allocation2] sm:$0xff]  ;;  %s215_s16 = sshll.u32 %s367_s15, 4  ;;  %s216_s16 = int_to_ptr.vmem [resolvable:$true] %s215_s16 }
  0x38   :  { %v254_v6 = vpack.c.bf16 %v70_v4, %v69_v2  ;;  %247 = vmatprep.mubr.msk.f32.mxu0 %vm80_vm0, %v65_v5  ;;  %v66_v7 = vld [vmem:[#allocation2 + $0x8] sm:$0xff]  ;;  %v228_v8 = vld [vmem:[%s490_s3] ss:$0 sm:$0xff]  ;;  %v162_v11 = vld [vmem:[#allocation5] sm:$0xff]  ;;  %s334_s17 = scalar_lea.vmem %s216_s16, 256  ;;  %p339_p11 = scmp.lt.s32.totalorder %s216_s16, %s216_s16 }
  0x39   :  { %251 = vmatprep.subr.bf16.mxu0 %v250_v3  ;;  %v163_v14 = vld [vmem:[#allocation5 + $0x8] sm:$0xff]  ;;  %v231_v36 = vld [vmem:[%s491_s4] ss:$0 sm:$0xff]  ;;  %p335_p10 = scmp.ne.s32.totalorder %s216_s16, %s334_s17  ;;  %p340_p12 = scmp.lt.s32.totalorder %s334_s17, %s334_s17 }
  0x3a   :  { %253 = vmatpush3.bf16.msra.mxu0 %v250_v3  ;;  %v232_v38 = vld [vmem:[%s492_s5] ss:$0 sm:$0xff] }
  0x3b   :  { %255 = vmatprep.subr.bf16.mxu0 %v254_v6  ;;  %p341_p13 = por %p340_p12, %p339_p11 }
  0x3d   :  { %p342_p0 = pnand %p341_p13, %p335_p10 }
  0x3e   :  { %257 = vmatpush3.bf16.msra.mxu0 %v254_v6 }
  0x41   :  { %248 = vmatmul.mubr.msk.f32.vlgmr.msra.gmra.mrb[0].mxu0 %vm80_vm0, %v66_v7 }
 0x114   :  { %v249_v9 = vpop.f32.mrb[0].mxu0 }
 0x115   :  { %v153_v10 = vpop.f32.mrb[1].mxu0  ;;  %v159_v12 = vadd.f32 %v249_v9, %v228_v8 }
 0x116   :  { %v154_v13 = vadd.f32 %v228_v8, %v153_v10 }
 0x117   :  { %v165_v17 = vadd.f32 %v163_v14, %v159_v12 }
 0x118   :  { %v164_v15 = vadd.f32 %v162_v11, %v154_v13 }
 0x119   :  { %v169_v18 = vsel %vm80_vm0, %v165_v17, 0.0 }
 0x11a   :  { %v166_v16 = vsel %vm80_vm0, %v164_v15, 0.0 }
 0x11b   :  { %167 = vadd.xlane.f32.xlu0 %v166_v16 }
 0x11f   :  { %170 = vadd.xlane.f32.xlu0 %v169_v18 }
 0x1a8   :  { %v168_v19 = vpop.xlane.xlu0 %167 }
 0x1a9   :  { %v172_v20 = vmul.f32 0.03125, %v168_v19 }
 0x1ab   :  { %v174_v21 = vsub.f32 %v164_v15, %v172_v20 }
 0x1ac   :  { %v171_v22 = vpop.xlane.xlu0 %170 }
 0x1ad   :  { %v173_v23 = vmul.f32 0.03125, %v171_v22  ;;  %v176_v24 = vmul.f32 %v174_v21, %v174_v21 }
 0x1af   :  { %v175_v25 = vsub.f32 %v165_v17, %v173_v23  ;;  %v178_v26 = vsel %vm80_vm0, %v176_v24, 0.0 }
 0x1b0   :  { %179 = vadd.xlane.f32.xlu1 %v178_v26 }
 0x1b1   :  { %v177_v27 = vmul.f32 %v175_v25, %v175_v25 }
 0x1b3   :  { %v181_v28 = vsel %vm80_vm0, %v177_v27, 0.0 }
 0x1b4   :  { %182 = vadd.xlane.f32.xlu1 %v181_v28 }
 0x23d   :  { %v180_v29 = vpop.xlane.xlu1 %179 }
 0x23e   :  { %v184_v30 = vmul.f32 0.03125, %v180_v29 }
 0x240   :  { %v186_v31 = vadd.f32 1e-05, %v184_v30 }
 0x241   :  { %v183_v32 = vpop.xlane.xlu1 %182 }
 0x242   :  { %264 = vrsqrt.f32 %v186_v31  ;;  %v185_v33 = vmul.f32 0.03125, %v183_v32 }
 0x244   :  { %v187_v34 = vadd.f32 1e-05, %v185_v33 }
 0x246   :  { %266 = vrsqrt.f32 %v187_v34 }
 0x24c   :  { %v265_v35 = vpop.eup %264 }
 0x24d   :  { %v190_v37 = vmul.f32 %v265_v35, %v174_v21 }
 0x24f   :  { %v198_v39 = vmul.f32 %v231_v36, %v190_v37 }
 0x250   :  { %v267_v40 = vpop.eup %266 }
 0x251   :  { %v191_v41 = vmul.f32 %v267_v40, %v175_v25  ;;  %v206_v42 = vadd.f32 %v232_v38, %v198_v39 }
 0x253   :  { %v199_v43 = vmul.f32 %v231_v36, %v191_v41  ;;  %208 = vst.msk [vmem:[#allocation8] sm:$0xff] %vm80_vm0, %v206_v42 }
 0x255   :  { %v207_v44 = vadd.f32 %v232_v38, %v199_v43 }
 0x257   :  { %209 = vst.msk [vmem:[#allocation8 + $0x8] sm:$0xff] %vm80_vm0, %v207_v44 }
 0x258   :  { %345 = shalt.err (!%p342_p0)
}
 0x259   :  { %s346_s18 = scalar_lea.hbm %s493_s6, 256 }
 0x25a   :  { %p347_p1 = scmp.ne.s32.totalorder %s493_s6, %s346_s18  ;;  %p350_p2 = scmp.lt.u32.totalorder %s346_s18, %s493_s6 }
 0x25c   :  { %p352_p3 = pnand %p350_p2, %p347_p1 }
 0x25e   :  { %355 = shalt.err (!%p352_p3)
}
 0x25f   :  { %221 = dma.vmem_to_hbm [thread:$0]  %s216_s16, 256, %s493_s6, [#allocation4], %s364_s9, %s364_s9, %s365_s10  }
 0x260   :  { %360 = dma.done.wait [#allocation4], 256  }
 0x261   :  { %361 = vsyncadd [#allocation4], 4294967040 }
 0x262   :  { %225 = vsyncpa [#allocation3], 1 }
 0x263   :  { %226 = vsyncpa [#allocation6], 1 }
 0x264   :  { %227 = vsyncpa [#allocation4], 1 }

</bundles_post_ra>
